<compile_context>
chip_gen: v5e
topology: v5e:2x2
jax: 0.10.0
libtpu: 0.0.40
codegen_flags: <defaults>
</compile_context>

<pallas_src>
import math

import jax
import jax.numpy as jnp
from jax.experimental import pallas as pl
from jax.experimental.pallas import tpu as pltpu


def actor_kernel(x_ref, w1_ref, b1_ref, w2_ref, b2_ref, w3_ref, b3_ref, scale_ref,
                 o_ref):
    # fc1 + relu (f32 MXU matmul, f32 accumulate)
    h1 = jnp.dot(x_ref[...], w1_ref[...], preferred_element_type=jnp.float32)
    h1 = jnp.maximum(h1 + b1_ref[...], 0.0)
    # fc2 + relu
    h2 = jnp.dot(h1, w2_ref[...], preferred_element_type=jnp.float32)
    h2 = jnp.maximum(h2 + b2_ref[...], 0.0)
    # fc3
    out = jnp.dot(h2, w3_ref[...], preferred_element_type=jnp.float32) + b3_ref[...]
    # out[:, :2] = tanh(out[:, :2]); out[:, 2:] = tanh(out[:, 2:]) * pi.
    # scale_ref is the precomputed per-column row [1, 1, pi, pi, ...], so the
    # epilogue is one EUP tanh + one VPU multiply (no iota/where/concat).
    o_ref[...] = (jnp.tanh(out) * scale_ref[...]).astype(o_ref.dtype)


def prepare_params(params):
    """Build call-invariant extras once (epilogue per-column scale row)."""
    w1, b1, w2, b2, w3, b3 = params
    out_size = w3.shape[1]
    # The PyTorch module hard-codes tanh on the first 2 columns.
    assert out_size >= 2, "ActorNetwork head split requires output_size >= 2"
    scale = jnp.concatenate(
        [jnp.ones((1, 2), jnp.float32),
         jnp.full((1, out_size - 2), jnp.pi, jnp.float32)], axis=1)
    return (w1, b1, w2, b2, w3, b3, scale)


def actor_forward(x, prepared, *, tb=512):
    """Fused 3-layer MLP forward. x: (B, input_size) f32. Returns (B, out_size) f32."""
    w1, b1, w2, b2, w3, b3, scale = prepared
    B, in_size = x.shape
    out_size = w3.shape[1]

    # Batch tile: large enough to amortize the fixed per-step pipeline overhead.
    # No wrapper-side padding: the ragged final block is masked by Pallas (the
    # math is row-independent, OOB output rows are never written back).
    if tb >= B:
        tb = B                        # single block covering the whole array
    else:
        tb = max(8, (tb // 8) * 8)    # sublane-aligned tile
    grid = (pl.cdiv(B, tb),)

    # Weights / biases / scale use constant index_maps -> loaded into VMEM once
    # and kept resident across all batch tiles.
    def const(a):
        return pl.BlockSpec(a.shape, lambda i: (0,) * a.ndim)

    # Scoped-VMEM budget: double-buffered x/out tiles + f32 h1/h2 intermediates
    # + resident weights, with headroom. Keeps very large tb safe on v5e
    # (16 MiB scoped default) while staying under v7x's 64 MiB physical VMEM.
    tile_bytes = 4 * (2 * tb * in_size + 2 * tb * out_size + tb * (256 + 128))
    weight_bytes = 4 * (in_size * 256 + 256 * 128 + 128 * out_size
                        + 256 + 128 + 2 * out_size)
    vmem_bytes = min(max(2 * (tile_bytes + weight_bytes), 16 << 20), 48 << 20)

    return pl.pallas_call(
        actor_kernel,
        out_shape=jax.ShapeDtypeStruct((B, out_size), jnp.float32),
        grid=grid,
        in_specs=[
            pl.BlockSpec((tb, in_size), lambda i: (i, 0)),   # x batch tile
            const(w1), const(b1),
            const(w2), const(b2),
            const(w3), const(b3),
            const(scale),
        ],
        out_specs=pl.BlockSpec((tb, out_size), lambda i: (i, 0)),
        compiler_params=pltpu.CompilerParams(
            dimension_semantics=("parallel",),
            vmem_limit_bytes=vmem_bytes),
    )(x, w1, b1, w2, b2, w3, b3, scale)


def init_params(key, input_size, output_size):
    # Deterministic init mimicking PyTorch nn.Linear (uniform +/- 1/sqrt(fan_in)).
    dims = [(input_size, 256), (256, 128), (128, output_size)]
    params = []
    for fan_in, fan_out in dims:
        kw, kb, key = jax.random.split(key, 3)
        bound = 1.0 / math.sqrt(fan_in)
        w = jax.random.uniform(kw, (fan_in, fan_out), jnp.float32, -bound, bound)
        b = jax.random.uniform(kb, (1, fan_out), jnp.float32, -bound, bound)
        params += [w, b]
    return params


def reference_forward(x, params):
    w1, b1, w2, b2, w3, b3 = params
    h1 = jnp.maximum(x @ w1 + b1, 0.0)
    h2 = jnp.maximum(h1 @ w2 + b2, 0.0)
    out = h2 @ w3 + b3
    head = jnp.tanh(out[:, :2])
    tail = jnp.tanh(out[:, 2:]) * jnp.pi
    return jnp.concatenate([head, tail], axis=1)


if __name__ == "__main__":
    key = jax.random.PRNGKey(0)
    input_size, output_size = 32, 4

    kx, kp = jax.random.split(key)
    params = init_params(kp, input_size, output_size)
    prepared = prepare_params(params)

    # Batched path with a ragged final block: 200 rows, tb=64 -> grid of 4 steps,
    # last block only partially covered (exercises the no-pad ragged path).
    batch = 200
    x = jax.random.normal(kx, (batch, input_size), jnp.float32)
    out = actor_forward(x, prepared, tb=64)
    jax.block_until_ready(out)
    ref = reference_forward(x, params)
    assert out.shape == (batch, output_size)
    # All-f32 matmuls -> tight tolerance vs. the f32 reference.
    assert jnp.allclose(out, ref, atol=1e-5, rtol=1e-5)

    # Small-batch path with the default tile: single block covering the array.
    x_small = x[:8]
    out_small = actor_forward(x_small, prepared)   # default tb=512 -> tb=B=8
    jax.block_until_ready(out_small)
    assert out_small.shape == (8, output_size)
    assert jnp.allclose(out_small, ref[:8], atol=1e-5, rtol=1e-5)

    print("KERNEL_OK")
</pallas_src>

<mosaic_0001>
module attributes {stable_mosaic.version = 11 : i64} {
  func.func @actor_kernel(%arg0: i32, %arg1: memref<64x32xf32, #tpu.memory_space<vmem>>, %arg2: memref<32x256xf32, #tpu.memory_space<vmem>>, %arg3: memref<1x256xf32, #tpu.memory_space<vmem>>, %arg4: memref<256x128xf32, #tpu.memory_space<vmem>>, %arg5: memref<1x128xf32, #tpu.memory_space<vmem>>, %arg6: memref<128x4xf32, #tpu.memory_space<vmem>>, %arg7: memref<1x4xf32, #tpu.memory_space<vmem>>, %arg8: memref<1x4xf32, #tpu.memory_space<vmem>>, %arg9: memref<64x4xf32, #tpu.memory_space<vmem>>) attributes {dimension_semantics = [#tpu.dimension_semantics<parallel>], iteration_bounds = array<i64: 4>, scalar_prefetch = 0 : i64, scratch_operands = 0 : i64, tpu.core_type = #tpu.core_type<tc>, window_params = [{transform_indices = @transform_0, window_bounds = array<i64: 64, 32>}, {pipeline_mode = #tpu.pipeline_mode<synchronous>, transform_indices = @transform_1, window_bounds = array<i64: 32, 256>}, {pipeline_mode = #tpu.pipeline_mode<synchronous>, transform_indices = @transform_2, window_bounds = array<i64: 1, 256>}, {pipeline_mode = #tpu.pipeline_mode<synchronous>, transform_indices = @transform_3, window_bounds = array<i64: 256, 128>}, {pipeline_mode = #tpu.pipeline_mode<synchronous>, transform_indices = @transform_4, window_bounds = array<i64: 1, 128>}, {pipeline_mode = #tpu.pipeline_mode<synchronous>, transform_indices = @transform_5, window_bounds = array<i64: 128, 4>}, {pipeline_mode = #tpu.pipeline_mode<synchronous>, transform_indices = @transform_6, window_bounds = array<i64: 1, 4>}, {pipeline_mode = #tpu.pipeline_mode<synchronous>, transform_indices = @transform_7, window_bounds = array<i64: 1, 4>}, {transform_indices = @transform_8, window_bounds = array<i64: 64, 4>}]} {
    %c0 = arith.constant 0 : index
    %c0_0 = arith.constant 0 : index
    %0 = vector.load %arg1[%c0, %c0_0] : memref<64x32xf32, #tpu.memory_space<vmem>>, vector<64x32xf32>
    %c0_1 = arith.constant 0 : index
    %c0_2 = arith.constant 0 : index
    %1 = vector.load %arg2[%c0_1, %c0_2] : memref<32x256xf32, #tpu.memory_space<vmem>>, vector<32x256xf32>
    %cst = arith.constant dense<0.000000e+00> : vector<64x256xf32>
    %2 = tpu.matmul %0, %1, %cst {dimension_numbers = #tpu.dot_dimension_numbers<[1], [0], [0], [1], [0, 0, 1, 1], [], []>} : vector<64x32xf32>, vector<32x256xf32>, vector<64x256xf32> -> vector<64x256xf32>
    %c0_3 = arith.constant 0 : index
    %c0_4 = arith.constant 0 : index
    %3 = vector.load %arg3[%c0_3, %c0_4] : memref<1x256xf32, #tpu.memory_space<vmem>>, vector<1x256xf32>
    %4 = vector.broadcast %3 : vector<1x256xf32> to vector<64x256xf32>
    %5 = arith.addf %2, %4 : vector<64x256xf32>
    %cst_5 = arith.constant 0.000000e+00 : f32
    %6 = vector.broadcast %cst_5 : f32 to vector<64x256xf32>
    %7 = arith.maximumf %5, %6 : vector<64x256xf32>
    %c0_6 = arith.constant 0 : index
    %c0_7 = arith.constant 0 : index
    %8 = vector.load %arg4[%c0_6, %c0_7] : memref<256x128xf32, #tpu.memory_space<vmem>>, vector<256x128xf32>
    %cst_8 = arith.constant dense<0.000000e+00> : vector<64x128xf32>
    %9 = tpu.matmul %7, %8, %cst_8 {dimension_numbers = #tpu.dot_dimension_numbers<[1], [0], [0], [1], [0, 0, 1, 1], [], []>} : vector<64x256xf32>, vector<256x128xf32>, vector<64x128xf32> -> vector<64x128xf32>
    %c0_9 = arith.constant 0 : index
    %c0_10 = arith.constant 0 : index
    %10 = vector.load %arg5[%c0_9, %c0_10] : memref<1x128xf32, #tpu.memory_space<vmem>>, vector<1x128xf32>
    %11 = vector.broadcast %10 : vector<1x128xf32> to vector<64x128xf32>
    %12 = arith.addf %9, %11 : vector<64x128xf32>
    %cst_11 = arith.constant 0.000000e+00 : f32
    %13 = vector.broadcast %cst_11 : f32 to vector<64x128xf32>
    %14 = arith.maximumf %12, %13 : vector<64x128xf32>
    %c0_12 = arith.constant 0 : index
    %c0_13 = arith.constant 0 : index
    %15 = vector.load %arg6[%c0_12, %c0_13] : memref<128x4xf32, #tpu.memory_space<vmem>>, vector<128x4xf32>
    %cst_14 = arith.constant dense<0.000000e+00> : vector<64x4xf32>
    %16 = tpu.matmul %14, %15, %cst_14 {dimension_numbers = #tpu.dot_dimension_numbers<[1], [0], [0], [1], [0, 0, 1, 1], [], []>} : vector<64x128xf32>, vector<128x4xf32>, vector<64x4xf32> -> vector<64x4xf32>
    %c0_15 = arith.constant 0 : index
    %c0_16 = arith.constant 0 : index
    %17 = vector.load %arg7[%c0_15, %c0_16] : memref<1x4xf32, #tpu.memory_space<vmem>>, vector<1x4xf32>
    %18 = vector.broadcast %17 : vector<1x4xf32> to vector<64x4xf32>
    %19 = arith.addf %16, %18 : vector<64x4xf32>
    %20 = math.tanh %19 : vector<64x4xf32>
    %c0_17 = arith.constant 0 : index
    %c0_18 = arith.constant 0 : index
    %21 = vector.load %arg8[%c0_17, %c0_18] : memref<1x4xf32, #tpu.memory_space<vmem>>, vector<1x4xf32>
    %22 = vector.broadcast %21 : vector<1x4xf32> to vector<64x4xf32>
    %23 = arith.mulf %20, %22 : vector<64x4xf32>
    %c0_19 = arith.constant 0 : index
    %c0_20 = arith.constant 0 : index
    %24 = vector.load %arg9[%c0_19, %c0_20] : memref<64x4xf32, #tpu.memory_space<vmem>>, vector<64x4xf32>
    tpu.vector_store %arg9[%c0_19, %c0_20], %23 {strides = array<i32>} : memref<64x4xf32, #tpu.memory_space<vmem>>, vector<64x4xf32>,
    return
  }
  func.func @transform_0(%arg0: i32) -> (i32, i32) {
    %c0_i32 = arith.constant 0 : i32
    %c0_i32_0 = arith.constant 0 : i32
    return %arg0, %c0_i32 : i32, i32
  }
  func.func @transform_1(%arg0: i32) -> (i32, i32) {
    %c0_i32 = arith.constant 0 : i32
    %c0_i32_0 = arith.constant 0 : i32
    %c0_i32_1 = arith.constant 0 : i32
    return %c0_i32, %c0_i32_0 : i32, i32
  }
  func.func @transform_2(%arg0: i32) -> (i32, i32) {
    %c0_i32 = arith.constant 0 : i32
    %c0_i32_0 = arith.constant 0 : i32
    %c0_i32_1 = arith.constant 0 : i32
    return %c0_i32, %c0_i32_0 : i32, i32
  }
  func.func @transform_3(%arg0: i32) -> (i32, i32) {
    %c0_i32 = arith.constant 0 : i32
    %c0_i32_0 = arith.constant 0 : i32
    %c0_i32_1 = arith.constant 0 : i32
    return %c0_i32, %c0_i32_0 : i32, i32
  }
  func.func @transform_4(%arg0: i32) -> (i32, i32) {
    %c0_i32 = arith.constant 0 : i32
    %c0_i32_0 = arith.constant 0 : i32
    %c0_i32_1 = arith.constant 0 : i32
    return %c0_i32, %c0_i32_0 : i32, i32
  }
  func.func @transform_5(%arg0: i32) -> (i32, i32) {
    %c0_i32 = arith.constant 0 : i32
    %c0_i32_0 = arith.constant 0 : i32
    %c0_i32_1 = arith.constant 0 : i32
    return %c0_i32, %c0_i32_0 : i32, i32
  }
  func.func @transform_6(%arg0: i32) -> (i32, i32) {
    %c0_i32 = arith.constant 0 : i32
    %c0_i32_0 = arith.constant 0 : i32
    %c0_i32_1 = arith.constant 0 : i32
    return %c0_i32, %c0_i32_0 : i32, i32
  }
  func.func @transform_7(%arg0: i32) -> (i32, i32) {
    %c0_i32 = arith.constant 0 : i32
    %c0_i32_0 = arith.constant 0 : i32
    %c0_i32_1 = arith.constant 0 : i32
    return %c0_i32, %c0_i32_0 : i32, i32
  }
  func.func @transform_8(%arg0: i32) -> (i32, i32) {
    %c0_i32 = arith.constant 0 : i32
    %c0_i32_0 = arith.constant 0 : i32
    return %arg0, %c0_i32 : i32, i32
  }
}

</mosaic_0001>

<bundles_post_ra>
// kernel: tpu_custom_call.1
= control target key start
LH: loop header
LB: loop body
LE: loop exit
PB: predicated region body
PF: predicated region fallthrough
CT: control target
= control target key end

     0   :  { %s1219_s27 = smov 0   ;;  %s1221_s28 = smov 0   ;;  %s1532_s0 = inlined_call_operand.vmem [shape: f32[200,32], index: 0, kind: input, shape index: {}]   ;;  %s1533_s1 = inlined_call_operand.vmem [shape: f32[32,256], index: 1, kind: input, shape index: {}]   ;;  %s1534_s2 = inlined_call_operand.vmem [shape: f32[1,256], index: 2, kind: input, shape index: {}]   ;;  %s1535_s3 = inlined_call_operand.vmem [shape: f32[256,128], index: 3, kind: input, shape index: {}]   ;;  %s1536_s4 = inlined_call_operand.vmem [shape: f32[1,128], index: 4, kind: input, shape index: {}]   ;;  %s1537_s5 = inlined_call_operand.vmem [shape: f32[128,4], index: 5, kind: input, shape index: {}]   ;;  %s1538_s6 = inlined_call_operand.vmem [shape: f32[1,4], index: 6, kind: input, shape index: {}]   ;;  %s1539_s7 = inlined_call_operand.vmem [shape: f32[1,4], index: 7, kind: input, shape index: {}]   ;;  %s1540_s8 = inlined_call_operand.vmem [shape: f32[200,4], index: 8, kind: output, shape index: {}]  }
   0x1   :  { %s1223_s29 = smov 0  }
   0x2 LB: > { %s1232_s30 = sadd.s32 4294967295, %s1140_s29   ;;  %s1234_s9 = sadd.s32 1, %s1140_s29   ;;  %s1140_s29 = sphi %s1223_s29, %s1548_s29   ;;  %s1136_s28 = sphi %s1221_s28, %s1547_s28   ;;  %s1132_s27 = sphi %s1219_s27, %s1546_s27  }
   0x3   : > { %s195_s10 = ssub.s32 %s1140_s29, %s1234_s9  ;;  %s198_s11 = sadd.s32 1, %s1136_s28 }
   0x4   : > { %p196_p0 = scmp.eq.s32.totalorder %s195_s10, 0  ;;  %p208_p1 = scmp.ne.s32.totalorder %s1136_s28, %s1132_s27 }
   0x5   : > { %p209_p2 = scmp.eq.s32.totalorder %s1232_s30, 3  ;;  %p935_p3 = scmp.ge.s32.totalorder %s1140_s29, 1 }
   0x6   : > { %s1242_s12 = scalar_select %p196_p0, %s1136_s28, %s198_s11  }
   0x7   : > { %p1244_p4 = por %p209_p2, %p208_p1  ;;  %p271_p5 = scmp.lt.s32.totalorder %s1140_s29, 5 }
   0x9   : > { %p272_p6 = pnand %p935_p3, %p271_p5 }
   0xa   : > { %s1255_s18 = sshll.u32 (!%p272_p6), %s1232_s30, 3  ;;  %s305_s17 = sand.u32 (!%p272_p6), 1, %s1132_s27  }
   0xb   : > { %275 = sbr.rel (%p272_p6) target bundleno = 558 (0x22e), region = 52  ;;  %p313_p7 = scmp.lt.s32.totalorder (!%p272_p6), %s1255_s18, 24 }
   0xc   : > { %s936_s19 = sshll.u32 (!%p272_p6), %s305_s17, 6 }
   0xd   : > { %s1453_s22 = scalar_lea.vmem (!%p272_p6), [#allocation2], %s936_s19  }
  0x10   : > { %v341_v0 = vld [vmem:[%s1533_s1 + $0x30] sm:$0xff]  ;;  %v339_v1 = vld [vmem:[%s1533_s1 + $0x20] sm:$0xff]  ;;  %s314_s21 = scalar_select %p313_p7, %s1255_s18, 24  ;;  %vm349_vm0 = vcmask 261120   ;;  %v342_v4 = vld [vmem:[%s1533_s1 + $0x38] sm:$0xff]  ;;  %vm679_vm1 = vcmask 31744  }
  0x11   : > { %386 = vmatpush.msra.mxu0 %v341_v0  ;;  %975 = vmatpush.msra.mxu1 %v341_v0  ;;  %v337_v2 = vld [vmem:[%s1533_s1 + $0x10] sm:$0xff]  ;;  %v335_v3 = vld [vmem:[%s1533_s1] sm:$0xff]  ;;  %v340_v7 = vld [vmem:[%s1533_s1 + $0x28] sm:$0xff]  ;;  %s696_s27 = ssub.s32 (%p1244_p4), 25, %s1255_s18  ;;  %s972_s23 = sshll.u32 (%p1244_p4), %s1232_s30, 6 }
  0x12   : > { %s938_s24 = sshll.u32 %s314_s21, 3  ;;  %v338_v8 = vld [vmem:[%s1533_s1 + $0x18] sm:$0xff]  ;;  %v336_v9 = vld [vmem:[%s1533_s1 + $0x8] sm:$0xff]  ;;  %v486_v17 = vld [vmem:[%s1535_s3 + $0x70] sm:$0xff]  ;;  %p697_p8 = scmp.lt.s32.totalorder (%p1244_p4), %s696_s27, 8 }
  0x13   : > { %387 = vmatpush.msra.mxu0 %v339_v1  ;;  %976 = vmatpush.msra.mxu1 %v339_v1  ;;  %s316_s29 = scalar_lea.vmem %s1532_s0, %s938_s24  ;;  %v487_v16 = vld [vmem:[%s1535_s3 + $0x78] sm:$0xff]  ;;  %v485_v18 = vld [vmem:[%s1535_s3 + $0x68] sm:$0xff]  ;;  %v484_v19 = vld [vmem:[%s1535_s3 + $0x60] sm:$0xff]  ;;  %s1478_s26 = scalar_lea.vmem (%p1244_p4), %s1540_s8, %s972_s23  }
  0x14   : > { %v327_v5 = vld [vmem:[%s316_s29] sm:$0xff]  ;;  %v328_v10 = vld [vmem:[%s316_s29 + $0x8] sm:$0xff]  ;;  %v329_v12 = vld [vmem:[%s316_s29 + $0x10] sm:$0xff]  ;;  %508 = vmatpush.msra.mxu2 %v487_v16 }
  0x15   : > { %388 = vmatpush.msra.mxu0 %v337_v2  ;;  %977 = vmatpush.msra.mxu1 %v337_v2  ;;  %v331_v6 = vld [vmem:[%s316_s29 + $0x20] sm:$0xff]  ;;  %v332_v11 = vld [vmem:[%s316_s29 + $0x28] sm:$0xff]  ;;  %v333_v13 = vld [vmem:[%s316_s29 + $0x30] sm:$0xff] }
  0x16   : > { %v330_v14 = vld [vmem:[%s316_s29 + $0x18] sm:$0xff]  ;;  %509 = vmatpush.msra.mxu2 %v486_v17  ;;  %v482_v21 = vld [vmem:[%s1535_s3 + $0x50] sm:$0xff]  ;;  %v481_v22 = vld [vmem:[%s1535_s3 + $0x48] sm:$0xff] }
  0x17   : > { %389 = vmatpush.msra.mxu0 %v335_v3  ;;  %978 = vmatpush.msra.mxu1 %v335_v3  ;;  %v334_v15 = vld [vmem:[%s316_s29 + $0x38] sm:$0xff]  ;;  %v480_v23 = vld [vmem:[%s1535_s3 + $0x40] sm:$0xff]  ;;  %v478_v25 = vld [vmem:[%s1535_s3 + $0x30] sm:$0xff] }
  0x18   : > { %939 = vmatmul.msk.f32.vlgmr.msra.gmra.mxu0 %vm349_vm0, %v327_v5  ;;  %943 = vmatmul.msk.f32.vlgmr.msra.gmra.mxu1 %vm349_vm0, %v331_v6  ;;  %v483_v20 = vld [vmem:[%s1535_s3 + $0x58] sm:$0xff]  ;;  %v477_v26 = vld [vmem:[%s1535_s3 + $0x28] sm:$0xff]  ;;  %v476_v27 = vld [vmem:[%s1535_s3 + $0x20] sm:$0xff] }
  0x19   : > { %427 = vmatpush.msrb.mxu1 %v342_v4  ;;  %510 = vmatpush.msra.mxu2 %v485_v18  ;;  %v479_v24 = vld [vmem:[%s1535_s3 + $0x38] sm:$0xff]  ;;  %v474_v29 = vld [vmem:[%s1535_s3 + $0x10] sm:$0xff]  ;;  %v473_v30 = vld [vmem:[%s1535_s3 + $0x8] sm:$0xff] }
  0x1a   : > { %v475_v28 = vld [vmem:[%s1535_s3 + $0x18] sm:$0xff]  ;;  %v472_v31 = vld [vmem:[%s1535_s3] sm:$0xff]  ;;  %v502_v33 = vld [vmem:[%s1535_s3 + $0xf0] sm:$0xff] }
  0x1b   : > { %428 = vmatpush.msrb.mxu1 %v340_v7  ;;  %511 = vmatpush.msra.mxu2 %v484_v19  ;;  %v503_v32 = vld [vmem:[%s1535_s3 + $0xf8] sm:$0xff]  ;;  %v501_v34 = vld [vmem:[%s1535_s3 + $0xe8] sm:$0xff]  ;;  %v500_v35 = vld [vmem:[%s1535_s3 + $0xe0] sm:$0xff] }
  0x1c   : > { %549 = vmatpush.msra.mxu3 %v503_v32  ;;  %v499_v36 = vld [vmem:[%s1535_s3 + $0xd8] sm:$0xff]  ;;  %v498_v37 = vld [vmem:[%s1535_s3 + $0xd0] sm:$0xff]  ;;  %v497_v38 = vld [vmem:[%s1535_s3 + $0xc8] sm:$0xff] }
  0x1d   : > { %429 = vmatpush.msrb.mxu1 %v338_v8  ;;  %512 = vmatpush.msra.mxu2 %v483_v20  ;;  %v496_v39 = vld [vmem:[%s1535_s3 + $0xc0] sm:$0xff]  ;;  %v495_v40 = vld [vmem:[%s1535_s3 + $0xb8] sm:$0xff]  ;;  %v494_v41 = vld [vmem:[%s1535_s3 + $0xb0] sm:$0xff] }
  0x1e   : > { %550 = vmatpush.msra.mxu3 %v502_v33  ;;  %v493_v42 = vld [vmem:[%s1535_s3 + $0xa8] sm:$0xff]  ;;  %v343_v43 = vld [vmem:[%s1534_s2] sm:$0x3]  ;;  %v491_v46 = vld [vmem:[%s1535_s3 + $0x98] sm:$0xff] }
  0x1f   : > { %430 = vmatpush.msrb.mxu1 %v336_v9  ;;  %513 = vmatpush.msra.mxu2 %v482_v21  ;;  %v492_v44 = vld [vmem:[%s1535_s3 + $0xa0] sm:$0xff]  ;;  %v345_v45 = vperm.slane %v343_v43, 0  ;;  %v490_v47 = vld [vmem:[%s1535_s3 + $0x90] sm:$0xff]  ;;  %v489_v51 = vld [vmem:[%s1535_s3 + $0x88] sm:$0xff]  ;;  %v346_v2 = vperm.slane %v343_v43, 1 }
  0x20   : > { %940 = vmatmul.msk.f32.gmra.mxu0 %vm349_vm0, %v328_v10  ;;  %944 = vmatmul.msk.f32.gmra.mxu1 %vm349_vm0, %v332_v11  ;;  %v488_v53 = vld [vmem:[%s1535_s3 + $0x80] sm:$0xff]  ;;  %v605_v43 = vld [vmem:[%s1537_s5 + $0x38] sm:$0xff] }
  0x21   : > { %514 = vmatpush.msra.mxu2 %v481_v22  ;;  %551 = vmatpush.msra.mxu3 %v501_v34 }
  0x23   : > { %515 = vmatpush.msra.mxu2 %v480_v23  ;;  %552 = vmatpush.msra.mxu3 %v500_v35  ;;  %v613_v35 = vld [vmem:[%s1537_s5 + $0x78] sm:$0xff] }
  0x24   : > { %618 = vmatpush.msrb.mxu0 %v613_v35 }
  0x25   : > { %516 = vmatpush.msra.mxu2 %v479_v24  ;;  %553 = vmatpush.msra.mxu3 %v499_v36  ;;  %v612_v36 = vld [vmem:[%s1537_s5 + $0x70] sm:$0xff] }
  0x26   : > { %619 = vmatpush.msrb.mxu0 %v612_v36 }
  0x27   : > { %517 = vmatpush.msra.mxu2 %v478_v25  ;;  %554 = vmatpush.msra.mxu3 %v498_v37  ;;  %v611_v37 = vld [vmem:[%s1537_s5 + $0x68] sm:$0xff] }
  0x28   : > { %941 = vmatmul.msk.f32.gmra.mxu0 %vm349_vm0, %v329_v12  ;;  %945 = vmatmul.msk.f32.gmra.mxu1 %vm349_vm0, %v333_v13 }
  0x29   : > { %518 = vmatpush.msra.mxu2 %v477_v26  ;;  %555 = vmatpush.msra.mxu3 %v497_v38  ;;  %v610_v38 = vld [vmem:[%s1537_s5 + $0x60] sm:$0xff] }
  0x2a   : > { %620 = vmatpush.msrb.mxu0 %v611_v37 }
  0x2b   : > { %519 = vmatpush.msra.mxu2 %v476_v27  ;;  %556 = vmatpush.msra.mxu3 %v496_v39  ;;  %v609_v39 = vld [vmem:[%s1537_s5 + $0x58] sm:$0xff] }
  0x2c   : > { %621 = vmatpush.msrb.mxu0 %v610_v38 }
  0x2d   : > { %520 = vmatpush.msra.mxu2 %v475_v28  ;;  %557 = vmatpush.msra.mxu3 %v495_v40  ;;  %v608_v40 = vld [vmem:[%s1537_s5 + $0x50] sm:$0xff] }
  0x2e   : > { %622 = vmatpush.msrb.mxu0 %v609_v39 }
  0x2f   : > { %521 = vmatpush.msra.mxu2 %v474_v29  ;;  %558 = vmatpush.msra.mxu3 %v494_v41  ;;  %v607_v41 = vld [vmem:[%s1537_s5 + $0x48] sm:$0xff] }
  0x30   : > { %942 = vmatmul.msk.f32.gmra.mxu0 %vm349_vm0, %v330_v14  ;;  %946 = vmatmul.msk.f32.gmra.mxu1 %vm349_vm0, %v334_v15 }
  0x31   : > { %522 = vmatpush.msra.mxu2 %v473_v30  ;;  %559 = vmatpush.msra.mxu3 %v493_v42  ;;  %v606_v42 = vld [vmem:[%s1537_s5 + $0x40] sm:$0xff] }
  0x32   : > { %623 = vmatpush.msrb.mxu0 %v608_v40 }
  0x33   : > { %523 = vmatpush.msra.mxu2 %v472_v31  ;;  %560 = vmatpush.msra.mxu3 %v492_v44  ;;  %v604_v44 = vld [vmem:[%s1537_s5 + $0x30] sm:$0xff] }
  0x34   : > { %624 = vmatpush.msrb.mxu0 %v607_v41 }
  0x35   : > { %561 = vmatpush.msra.mxu3 %v491_v46  ;;  %v602_v46 = vld [vmem:[%s1537_s5 + $0x20] sm:$0xff] }
  0x36   : > { %625 = vmatpush.msrb.mxu0 %v606_v42 }
  0x37   : > { %562 = vmatpush.msra.mxu3 %v490_v47  ;;  %v601_v47 = vld [vmem:[%s1537_s5 + $0x18] sm:$0xff] }
  0x38   : > { %947 = vmatmul.msk.f32.vlgmr.msrb.gmra.mxu1 %vm349_vm0, %v327_v5  ;;  %626 = vmatpush.msrb.mxu0 %v605_v43 }
  0x39   : > { %563 = vmatpush.msra.mxu3 %v489_v51 }
  0x3a   : > { %627 = vmatpush.msrb.mxu0 %v604_v44 }
  0x3b   : > { %564 = vmatpush.msra.mxu3 %v488_v53  ;;  %v1067_v53 = vld [vmem:[%s1536_s4] ss:$0 sm:$0xff] }
  0x40   : > { %948 = vmatmul.msk.f32.gmra.mxu1 %vm349_vm0, %v328_v10 }
  0x48   : > { %949 = vmatmul.msk.f32.gmra.mxu1 %vm349_vm0, %v329_v12 }
  0x50   : > { %950 = vmatmul.msk.f32.gmra.mxu1 %vm349_vm0, %v330_v14 }
  0x58   : > { %951 = vmatmul.msk.f32.gmra.mxu1 %vm349_vm0, %v331_v6 }
  0x60   : > { %952 = vmatmul.msk.f32.gmra.mxu1 %vm349_vm0, %v332_v11 }
  0x68   : > { %953 = vmatmul.msk.f32.gmra.mxu1 %vm349_vm0, %v333_v13 }
  0x70   : > { %954 = vmatmul.msk.f32.gmra.mxu1 %vm349_vm0, %v334_v15 }
  0x95   : > { %v391_v48 = vpop.f32.mrf.mxu0  ;;  %v403_v49 = vpop.f32.mrf.mxu1 }
  0x96   : > { %v392_v50 = vadd.f32 %v391_v48, %v345_v45  ;;  %v404_v3 = vadd.f32 %v403_v49, %v345_v45  ;;  %v600_v48 = vld [vmem:[%s1537_s5 + $0x10] sm:$0xff]  ;;  %v599_v49 = vld [vmem:[%s1537_s5 + $0x8] sm:$0xff] }
  0x98   : > { %v456_v52 = vmax.f32 %v392_v50, 0.0  ;;  %v464_v6 = vmax.f32 %v404_v3, 0.0  ;;  %v598_v50 = vld [vmem:[%s1537_s5] sm:$0xff] }
  0x9a   : > { %524 = vmatmul.f32.vlgmr.msra.gmra.mxu2 %v456_v52 }
  0x9d   : > { %v394_v54 = vpop.f32.mrf.mxu0  ;;  %v406_v55 = vpop.f32.mrf.mxu1 }
  0x9e   : > { %v395_v56 = vadd.f32 %v394_v54, %v345_v45  ;;  %v407_v8 = vadd.f32 %v406_v55, %v345_v45 }
  0xa0   : > { %v458_v57 = vmax.f32 %v395_v56, 0.0  ;;  %v466_v11 = vmax.f32 %v407_v8, 0.0 }
  0xa2   : > { %527 = vmatmul.f32.gmra.mxu2 %v458_v57 }
  0xa5   : > { %v397_v58 = vpop.f32.mrf.mxu0  ;;  %v409_v59 = vpop.f32.mrf.mxu1 }
  0xa6   : > { %v398_v60 = vadd.f32 %v397_v58, %v345_v45  ;;  %v410_v13 = vadd.f32 %v409_v59, %v345_v45 }
  0xa8   : > { %v460_v61 = vmax.f32 %v398_v60, 0.0  ;;  %v468_v16 = vmax.f32 %v410_v13, 0.0 }
  0xaa   : > { %530 = vmatmul.f32.gmra.mxu2 %v460_v61 }
  0xad   : > { %v400_v62 = vpop.f32.mrf.mxu0  ;;  %v412_v63 = vpop.f32.mrf.mxu1 }
  0xae   : > { %v401_v0 = vadd.f32 %v400_v62, %v345_v45  ;;  %v413_v18 = vadd.f32 %v412_v63, %v345_v45  ;;  %v603_v45 = vld [vmem:[%s1537_s5 + $0x28] sm:$0xff] }
  0xaf   : > { %628 = vmatpush.msrb.mxu0 %v603_v45 }
  0xb0   : > { %v462_v1 = vmax.f32 %v401_v0, 0.0  ;;  %v470_v21 = vmax.f32 %v413_v18, 0.0 }
  0xb1   : > { %629 = vmatpush.msrb.mxu0 %v602_v46 }
  0xb2   : > { %533 = vmatmul.f32.gmra.mxu2 %v462_v1 }
  0xb3   : > { %630 = vmatpush.msrb.mxu0 %v601_v47 }
  0xb5   : > { %v432_v4 = vpop.f32.mrf.mxu1  ;;  %631 = vmatpush.msrb.mxu0 %v600_v48 }
  0xb6   : > { %v433_v5 = vadd.f32 %v432_v4, %v346_v2 }
  0xb7   : > { %632 = vmatpush.msrb.mxu0 %v599_v49 }
  0xb8   : > { %v457_v7 = vmax.f32 %v433_v5, 0.0 }
  0xb9   : > { %633 = vmatpush.msrb.mxu0 %v598_v50 }
  0xba   : > { %536 = vmatmul.f32.gmra.mxu2 %v464_v6  ;;  %565 = vmatmul.f32.vlgmr.msra.gmra.mxu3 %v457_v7 }
  0xbd   : > { %v435_v9 = vpop.f32.mrf.mxu1 }
  0xbe   : > { %v436_v10 = vadd.f32 %v435_v9, %v346_v2 }
  0xc0   : > { %v459_v12 = vmax.f32 %v436_v10, 0.0 }
  0xc2   : > { %539 = vmatmul.f32.gmra.mxu2 %v466_v11  ;;  %568 = vmatmul.f32.gmra.mxu3 %v459_v12 }
  0xc5   : > { %v438_v14 = vpop.f32.mrf.mxu1 }
  0xc6   : > { %v439_v15 = vadd.f32 %v438_v14, %v346_v2 }
  0xc8   : > { %v461_v17 = vmax.f32 %v439_v15, 0.0 }
  0xca   : > { %542 = vmatmul.f32.gmra.mxu2 %v468_v16  ;;  %571 = vmatmul.f32.gmra.mxu3 %v461_v17 }
  0xcd   : > { %v441_v19 = vpop.f32.mrf.mxu1 }
  0xce   : > { %v442_v20 = vadd.f32 %v441_v19, %v346_v2 }
  0xd0   : > { %v463_v22 = vmax.f32 %v442_v20, 0.0 }
  0xd2   : > { %545 = vmatmul.f32.gmra.mxu2 %v470_v21  ;;  %574 = vmatmul.f32.gmra.mxu3 %v463_v22 }
  0xd5   : > { %v444_v23 = vpop.f32.mrf.mxu1 }
  0xd6   : > { %v445_v24 = vadd.f32 %v444_v23, %v346_v2 }
  0xd8   : > { %v465_v25 = vmax.f32 %v445_v24, 0.0 }
  0xda   : > { %577 = vmatmul.f32.gmra.mxu3 %v465_v25 }
  0xdd   : > { %v447_v26 = vpop.f32.mrf.mxu1 }
  0xde   : > { %v448_v27 = vadd.f32 %v447_v26, %v346_v2 }
  0xe0   : > { %v467_v28 = vmax.f32 %v448_v27, 0.0 }
  0xe2   : > { %580 = vmatmul.f32.gmra.mxu3 %v467_v28  ;;  %v1068_v28 = vld [vmem:[%s1538_s6] ss:$0 sm:$0xff] }
  0xe5   : > { %v450_v29 = vpop.f32.mrf.mxu1 }
  0xe6   : > { %v451_v30 = vadd.f32 %v450_v29, %v346_v2 }
  0xe8   : > { %v469_v31 = vmax.f32 %v451_v30, 0.0 }
  0xea   : > { %583 = vmatmul.f32.gmra.mxu3 %v469_v31  ;;  %v1069_v31 = vld [vmem:[%s1539_s7] ss:$0 sm:$0xff] }
  0xed   : > { %v453_v32 = vpop.f32.mrf.mxu1 }
  0xee   : > { %v454_v33 = vadd.f32 %v453_v32, %v346_v2 }
  0xf0   : > { %v471_v34 = vmax.f32 %v454_v33, 0.0 }
  0xf2   : > { %586 = vmatmul.f32.gmra.mxu3 %v471_v34 }
 0x11d   : > { %v525_v51 = vpop.f32.mrf.mxu2 }
 0x11e   : > { %v526_v54 = vadd.f32 %v1067_v53, %v525_v51 }
 0x125   : > { %v528_v52 = vpop.f32.mrf.mxu2 }
 0x126   : > { %v529_v59 = vadd.f32 %v1067_v53, %v528_v52 }
 0x12d   : > { %v531_v57 = vpop.f32.mrf.mxu2 }
 0x12e   : > { %v532_v0 = vadd.f32 %v1067_v53, %v531_v57 }
 0x135   : > { %v534_v63 = vpop.f32.mrf.mxu2 }
 0x136   : > { %v535_v4 = vadd.f32 %v1067_v53, %v534_v63 }
 0x13d   : > { %v566_v55 = vpop.f32.mrf.mxu3  ;;  %v537_v5 = vpop.f32.mrf.mxu2 }
 0x13e   : > { %v567_v56 = vadd.f32 %v566_v55, %v526_v54  ;;  %v538_v9 = vadd.f32 %v1067_v53, %v537_v5 }
 0x140   : > { %v590_v58 = vmax.f32 %v567_v56, 0.0 }
 0x142   : > { %634 = vmatmul.f32.vlgmr.msrb.gmra.mxu0 %v590_v58 }
 0x145   : > { %v569_v60 = vpop.f32.mrf.mxu3  ;;  %v540_v10 = vpop.f32.mrf.mxu2 }
 0x146   : > { %v570_v61 = vadd.f32 %v569_v60, %v529_v59  ;;  %v541_v14 = vadd.f32 %v1067_v53, %v540_v10 }
 0x148   : > { %v591_v62 = vmax.f32 %v570_v61, 0.0 }
 0x14a   : > { %637 = vmatmul.f32.gmra.mxu0 %v591_v62 }
 0x14d   : > { %v572_v1 = vpop.f32.mrf.mxu3  ;;  %v543_v17 = vpop.f32.mrf.mxu2 }
 0x14e   : > { %v573_v2 = vadd.f32 %v572_v1, %v532_v0  ;;  %v544_v19 = vadd.f32 %v1067_v53, %v543_v17 }
 0x150   : > { %v592_v3 = vmax.f32 %v573_v2, 0.0 }
 0x152   : > { %640 = vmatmul.f32.gmra.mxu0 %v592_v3 }
 0x155   : > { %v575_v6 = vpop.f32.mrf.mxu3  ;;  %v546_v23 = vpop.f32.mrf.mxu2 }
 0x156   : > { %v576_v7 = vadd.f32 %v575_v6, %v535_v4  ;;  %v547_v24 = vadd.f32 %v1067_v53, %v546_v23 }
 0x158   : > { %v593_v8 = vmax.f32 %v576_v7, 0.0 }
 0x15a   : > { %643 = vmatmul.f32.gmra.mxu0 %v593_v8 }
 0x15d   : > { %v578_v11 = vpop.f32.mrf.mxu3 }
 0x15e   : > { %v579_v12 = vadd.f32 %v578_v11, %v538_v9 }
 0x160   : > { %v594_v13 = vmax.f32 %v579_v12, 0.0 }
 0x162   : > { %646 = vmatmul.f32.gmra.mxu0 %v594_v13 }
 0x165   : > { %v581_v15 = vpop.f32.mrf.mxu3 }
 0x166   : > { %v582_v16 = vadd.f32 %v581_v15, %v541_v14 }
 0x168   : > { %v595_v18 = vmax.f32 %v582_v16, 0.0 }
 0x16a   : > { %649 = vmatmul.f32.gmra.mxu0 %v595_v18 }
 0x16d   : > { %v584_v20 = vpop.f32.mrf.mxu3 }
 0x16e   : > { %v585_v21 = vadd.f32 %v584_v20, %v544_v19 }
 0x170   : > { %v596_v22 = vmax.f32 %v585_v21, 0.0 }
 0x172   : > { %652 = vmatmul.f32.gmra.mxu0 %v596_v22 }
 0x175   : > { %v587_v25 = vpop.f32.mrf.mxu3 }
 0x176   : > { %v588_v26 = vadd.f32 %v587_v25, %v547_v24 }
 0x178   : > { %v597_v27 = vmax.f32 %v588_v26, 0.0 }
 0x17a   : > { %655 = vmatmul.f32.gmra.mxu0 %v597_v27 }
 0x1bf   : > { %v635_v29 = vpop.f32.mrf.mxu0 }
 0x1c0   : > { %v636_v30 = vadd.f32 %v1068_v28, %v635_v29 }
 0x1c2   : > { %1070 = vtanh.f32 %v636_v30 }
 0x1c7   : > { %v638_v32 = vpop.f32.mrf.mxu0 }
 0x1c8   : > { %v1071_v33 = vpop.eup %1070  ;;  %v639_v34 = vadd.f32 %v1068_v28, %v638_v32 }
 0x1c9   : > { %v671_v35 = vmul.f32 %v1071_v33, %v1069_v31 }
 0x1ca   : > { %1072 = vtanh.f32 %v639_v34 }
 0x1cb   : > { %680 = vst.msk [vmem:[%s1453_s22] sm:$0xff] %vm679_vm1, %v671_v35 }
 0x1cf   : > { %v641_v36 = vpop.f32.mrf.mxu0 }
 0x1d0   : > { %v1073_v37 = vpop.eup %1072  ;;  %v642_v38 = vadd.f32 %v1068_v28, %v641_v36 }
 0x1d1   : > { %v672_v39 = vmul.f32 %v1073_v37, %v1069_v31 }
 0x1d2   : > { %1074 = vtanh.f32 %v642_v38 }
 0x1d3   : > { %681 = vst.msk [vmem:[%s1453_s22 + $0x8] sm:$0xff] %vm679_vm1, %v672_v39 }
 0x1d7   : > { %v644_v40 = vpop.f32.mrf.mxu0 }
 0x1d8   : > { %v1075_v41 = vpop.eup %1074  ;;  %v645_v42 = vadd.f32 %v1068_v28, %v644_v40 }
 0x1d9   : > { %v673_v43 = vmul.f32 %v1075_v41, %v1069_v31 }
 0x1da   : > { %1076 = vtanh.f32 %v645_v42 }
 0x1db   : > { %682 = vst.msk [vmem:[%s1453_s22 + $0x10] sm:$0xff] %vm679_vm1, %v673_v43 }
 0x1df   : > { %v647_v44 = vpop.f32.mrf.mxu0 }
 0x1e0   : > { %v1077_v45 = vpop.eup %1076  ;;  %v648_v46 = vadd.f32 %v1068_v28, %v647_v44 }
 0x1e1   : > { %v674_v47 = vmul.f32 %v1077_v45, %v1069_v31 }
 0x1e2   : > { %1078 = vtanh.f32 %v648_v46 }
 0x1e3   : > { %683 = vst.msk [vmem:[%s1453_s22 + $0x18] sm:$0xff] %vm679_vm1, %v674_v47 }
 0x1e7   : > { %v650_v48 = vpop.f32.mrf.mxu0 }
 0x1e8   : > { %v1079_v49 = vpop.eup %1078  ;;  %v651_v50 = vadd.f32 %v1068_v28, %v650_v48 }
 0x1e9   : > { %v675_v51 = vmul.f32 %v1079_v49, %v1069_v31 }
 0x1ea   : > { %1080 = vtanh.f32 %v651_v50 }
 0x1eb   : > { %684 = vst.msk [vmem:[%s1453_s22 + $0x20] sm:$0xff] %vm679_vm1, %v675_v51 }
 0x1ef   : > { %v653_v52 = vpop.f32.mrf.mxu0 }
 0x1f0   : > { %v1081_v53 = vpop.eup %1080  ;;  %v654_v54 = vadd.f32 %v1068_v28, %v653_v52 }
 0x1f1   : > { %v676_v55 = vmul.f32 %v1081_v53, %v1069_v31 }
 0x1f2   : > { %1082 = vtanh.f32 %v654_v54 }
 0x1f3   : > { %685 = vst.msk [vmem:[%s1453_s22 + $0x28] sm:$0xff] %vm679_vm1, %v676_v55 }
 0x1f7   : > { %v656_v56 = vpop.f32.mrf.mxu0 }
 0x1f8   : > { %v1083_v57 = vpop.eup %1082  ;;  %v657_v58 = vadd.f32 %v1068_v28, %v656_v56 }
 0x1f9   : > { %v677_v59 = vmul.f32 %v1083_v57, %v1069_v31 }
 0x1fa   : > { %1084 = vtanh.f32 %v657_v58 }
 0x1fb   : > { %686 = vst.msk [vmem:[%s1453_s22 + $0x30] sm:$0xff] %vm679_vm1, %v677_v59 }
 0x1ff   : > { %694 = sbr.rel (!%p1244_p4) target bundleno = 558 (0x22e), region = 56 }
 0x200   : > { %v1085_v60 = vpop.eup %1084 }
 0x201   : > { %v678_v61 = vmul.f32 %v1085_v60, %v1069_v31 }
 0x203   : > { %687 = vst.msk [vmem:[%s1453_s22 + $0x38] sm:$0xff] %vm679_vm1, %v678_v61 }
 0x204   : > { %s1550_s27 = smov (!%p697_p8, %s696_s27), 8 }
 0x205   : > { %s957_s29 = sshll.u32 %s1550_s27, 3 }
 0x206   : > { %p960_p9 = scmp.eq.s32.totalorder %s957_s29, 0 }
 0x207   : > { %s1484_s10 = sshrl.u32 (!%p960_p9), %s1550_s27, 3 }
 0x208   : > { %705 = sbr.rel (%p960_p9) target bundleno = 558 (0x22e), region = 60  ;;  %p961_p10 = scmp.le.s32.totalorder (!%p960_p9), %s1484_s10, 0 }
 0x20d   : > { %888 = sbr.rel (%p961_p10) target bundleno = 541 (0x21d), region = 136  ;;  %s1542_s30 = smov (!%p961_p10), %s1478_s26 }
 0x20e   : > { %s1543_s13 = smov (!%p961_p10), %s1453_s22  ;;  %s1493_s18 = smov (!%p961_p10), 0  }
 0x20f   : > { %s1495_s11 = smov (!%p961_p10), 0  }
 0x212 LB: >> { %v782_v62 = vld [vmem:[%s1148_s13] sm:$0xff]  ;;  %v784_v63 = vld [vmem:[%s1148_s13 + $0x8] sm:$0xff]  ;;  %v786_v0 = vld [vmem:[%s1148_s13 + $0x10] sm:$0xff]  ;;  %s798_s14 = sadd.s32 1, %s1152_s18  ;;  %s776_s11 = sadd.s32 1, %s1156_s11   ;;  %s1156_s11 = sphi %s1495_s11, %s776_s11   ;;  %s1152_s18 = sphi %s1493_s18, %s1545_s18   ;;  %s1148_s13 = sphi %s1543_s13, %s803_s13   ;;  %s1144_s30 = sphi %s1542_s30, %s1544_s30  }
 0x213   : >> { %783 = vst [vmem:[%s1144_s30] sm:$0xff] %v782_v62  ;;  %v788_v1 = vld [vmem:[%s1148_s13 + $0x18] sm:$0xff]  ;;  %p799_p11 = scmp.ge.s32.totalorder %s798_s14, %s1484_s10  ;;  %v790_v2 = vld [vmem:[%s1148_s13 + $0x20] sm:$0xff]  ;;  %v792_v3 = vld [vmem:[%s1148_s13 + $0x28] sm:$0xff]  ;;  %p775_p12 = scmp.ge.s32.totalorder %s776_s11, %s1484_s10 }
 0x214   : >> { %785 = vst [vmem:[%s1144_s30 + $0x8] sm:$0xff] %v784_v63  ;;  %v794_v4 = vld [vmem:[%s1148_s13 + $0x30] sm:$0xff]  ;;  %v796_v5 = vld [vmem:[%s1148_s13 + $0x38] sm:$0xff] }
 0x215   : >> { %787 = vst [vmem:[%s1144_s30 + $0x10] sm:$0xff] %v786_v0  ;;  %s1552_s14 = smov (%p799_p11, %s798_s14), 0 }
 0x216   : >> { %789 = vst [vmem:[%s1144_s30 + $0x18] sm:$0xff] %v788_v1  ;;  %s962_s15 = sshll.u32 %s1552_s14, 6  ;;  %s1545_s18 = smov %s1552_s14 }
 0x217   : >> { %791 = vst [vmem:[%s1144_s30 + $0x20] sm:$0xff] %v790_v2  ;;  %s803_s13 = scalar_lea.vmem %s1453_s22, %s962_s15 [#allocation2]   ;;  %s804_s16 = scalar_lea.vmem %s1478_s26, %s962_s15  }
 0x218   : >> { %793 = vst [vmem:[%s1144_s30 + $0x28] sm:$0xff] %v792_v3  ;;  %778 = sbr.rel (!%p775_p12) target bundleno = 530 (0x212), region = 142 }
 0x219   : >> { %795 = vst [vmem:[%s1144_s30 + $0x30] sm:$0xff] %v794_v4 }
 0x21a   : >> { %797 = vst [vmem:[%s1144_s30 + $0x38] sm:$0xff] %v796_v5  ;;  %s1544_s30 = smov %s804_s16 }
 0x21d PF: > { %s1514_s17 = sand.u32 7, %s1550_s27   ;;  %s973_s19 = sshll.u32 %s1484_s10, 6 }
 0x21e   : > { %s809_s20 = scalar_lea.vmem %s1453_s22, %s973_s19 [#allocation2]   ;;  %s811_s21 = scalar_lea.vmem %s1478_s26, %s973_s19  }
 0x21f   : > { %p967_p13 = scmp.le.s32.totalorder %s1514_s17, 0 }
 0x220   : > { %s1158_s23 = smov (!%p967_p13), %s811_s21   ;;  %s1162_s24 = smov (!%p967_p13), %s809_s20  }
 0x221   : > { %902 = sbr.rel (%p967_p13) target bundleno = 558 (0x22e), region = 147  ;;  %s1166_s25 = smov (!%p967_p13), 0  }
 0x222   : > { %s1170_s29 = smov (!%p967_p13), 0  }
 0x226 LB: >> { %v821_v6 = vld [vmem:[%s1164_s24] sm:$0xff]  ;;  %s823_s27 = sadd.s32 1, %s1168_s25  ;;  %s815_s29 = sadd.s32 1, %s1172_s29   ;;  %s1172_s29 = sphi %s1170_s29, %s815_s29   ;;  %s1168_s25 = sphi %s1166_s25, %s1167_s25   ;;  %s1164_s24 = sphi %s1162_s24, %s828_s24   ;;  %s1160_s23 = sphi %s1158_s23, %s829_s23  }
 0x227   : >> { %822 = vst [vmem:[%s1160_s23] sm:$0xff] %v821_v6  ;;  %p824_p0 = scmp.ge.s32.totalorder %s823_s27, %s1514_s17  ;;  %p814_p1 = scmp.ge.s32.totalorder %s815_s29, %s1514_s17 }
 0x229   : >> { %s1554_s27 = smov (%p824_p0, %s823_s27), 0  ;;  %817 = sbr.rel (!%p814_p1) target bundleno = 550 (0x226), region = 153 }
 0x22a   : >> { %s968_s22 = sshll.u32 %s1554_s27, 3  ;;  %s1167_s25 = smov %s1554_s27  }
 0x22b   : >> { %s828_s24 = scalar_lea.vmem %s809_s20, %s968_s22 [#allocation2]   ;;  %s829_s23 = scalar_lea.vmem %s811_s21, %s968_s22  }
 0x22e PF: > { %p15_p2 = scmp.ge.s32.totalorder %s1234_s9, 6   ;;  %s1546_s27 = smov %s1136_s28 }
 0x22f   : > { %s1547_s28 = smov %s1242_s12  ;;  %s1548_s29 = smov %s1234_s9 }
 0x230   :  { %17 = sbr.rel (!%p15_p2) target bundleno = 2 (0x2), region = 164 }

</bundles_post_ra>
